<compile_context>
chip_gen: v6e
topology: v6e:2x2x1
jax: 0.10.0
libtpu: 0.0.40
codegen_flags: <defaults>
</compile_context>

<pallas_src>
import jax
import jax.numpy as jnp
from jax.experimental import pallas as pl
from jax.experimental.pallas import tpu as pltpu

_LANE = 128


def _round_up(x, m):
    return (x + m - 1) // m * m


def _gelu_exact(x):
    # PyTorch nn.GELU() default = exact erf formulation.
    return 0.5 * x * (1.0 + jax.lax.erf(x * 0.7071067811865476))


# ----------------------------- Pallas kernel -------------------------------

def _make_kernel(n_tables: int, n_numeric: int, num_hidden: int,
                 hidden_real: int, ln_eps: float = 1e-5, l2_eps: float = 1e-12):
    """Ref order: [xin, g_num, g_cat, w_hidden, vecs, w_last, out]."""
    inv_h = 1.0 / float(hidden_real)

    def kernel(xin_ref, gnum_ref, gcat_ref, wh_ref, vec_ref, wl_ref, out_ref):
        xin = xin_ref[...]                          # (tm, n_num + n_tables) f32
        tm = xin.shape[0]
        x_num = xin[:, :n_numeric]                  # (tm, n_num)
        # Indices were pre-offset per table and carried as exact small-int
        # floats; float->int truncation is exact here.
        idx = xin[:, n_numeric:].astype(jnp.int32)  # (tm, n_tables)

        # Single one-hot over ALL stacked table rows (exact gather).
        rows = gcat_ref.shape[0]
        lane = jax.lax.broadcasted_iota(jnp.int32, (tm, rows), 1)
        onehot = (lane == idx[:, 0:1]).astype(jnp.float32)
        for t in range(1, n_tables):
            onehot = onehot + (lane == idx[:, t:t + 1]).astype(jnp.float32)

        # First Linear is pre-folded into g_num / g_cat -> this IS the
        # first-layer pre-activation.
        h = jnp.dot(x_num, gnum_ref[...], preferred_element_type=jnp.float32)
        h = h + jnp.dot(onehot, gcat_ref[...], preferred_element_type=jnp.float32)
        h = h + vec_ref[0:1, :]                     # b_first (sublane broadcast)
        h = _gelu_exact(h)

        # Hidden blocks: Linear -> Dropout(eval = identity) -> LayerNorm -> GELU
        for l in range(num_hidden):
            b = vec_ref[1 + 3 * l:2 + 3 * l, :]
            gamma = vec_ref[2 + 3 * l:3 + 3 * l, :]
            beta = vec_ref[3 + 3 * l:4 + 3 * l, :]
            h = jnp.dot(h, wh_ref[l], preferred_element_type=jnp.float32) + b
            # One-pass LayerNorm over the `hidden_real` real lanes
            # (padded lanes are exactly 0, so plain lane-sums are correct).
            s1 = jnp.sum(h, axis=-1, keepdims=True)
            s2 = jnp.sum(h * h, axis=-1, keepdims=True)
            mean = s1 * inv_h
            var = jnp.maximum(s2 * inv_h - mean * mean, 0.0)   # clamp: no NaN
            h = (h - mean) * jax.lax.rsqrt(var + ln_eps) * gamma + beta
            h = _gelu_exact(h)

        # Last Linear + L2 normalize (torch.nn.functional.normalize, dim=1):
        # y / max(||y||, eps) == y * rsqrt(max(||y||^2, eps^2)).
        y = jnp.dot(h, wl_ref[...], preferred_element_type=jnp.float32) \
            + vec_ref[1 + 3 * num_hidden:2 + 3 * num_hidden, :]
        ss = jnp.sum(y * y, axis=-1, keepdims=True)
        y = y * jax.lax.rsqrt(jnp.maximum(ss, l2_eps * l2_eps))
        out_ref[...] = y.astype(out_ref.dtype)

    return kernel


# --------------------------- parameter packing -------------------------------

def pack_params(params, n_numeric):
    """One-time prep: fold w_first into the gather matrices, pad to 128 lanes."""
    f32 = jnp.float32
    P = _LANE
    hp = jax.lax.Precision.HIGHEST

    w_first, b_first = params["w_first"], params["b_first"]
    in_shape, h0 = w_first.shape
    hidden = params["hidden"]
    w_last, b_last = params["w_last"], params["b_last"]
    emb_dim = w_last.shape[1]

    assert len(hidden) >= 1
    assert len(params["emb_tables"]) >= 1
    assert h0 <= P and emb_dim <= P
    for (w, _, _, _) in hidden:
        assert w.shape == (h0, h0), "packed path assumes uniform hidden width"

    # Numeric rows of w_first (fold: x_num @ g_num == x_num @ w_first[:n_num]).
    g_num = jnp.zeros((n_numeric, P), f32).at[:, :h0].set(w_first[:n_numeric, :])

    # Stacked folded tables: rows of table t become (table_t @ w_first slice).
    folded = []
    row_offsets = []
    col = n_numeric
    roff = 0
    for tbl in params["emb_tables"]:
        rows, d = tbl.shape
        folded.append(jnp.dot(tbl.astype(f32), w_first[col:col + d, :],
                              precision=hp))
        row_offsets.append(roff)
        col += d
        roff += rows
    assert col == in_shape
    r_total = roff
    assert r_total <= 2048, "one-hot gather path assumes small total vocab"

    g_cat = jnp.zeros((r_total, P), f32)
    r = 0
    for blk in folded:
        g_cat = g_cat.at[r:r + blk.shape[0], :h0].set(blk)
        r += blk.shape[0]

    def pad_mat(w):
        return jnp.zeros((P, P), f32).at[:w.shape[0], :w.shape[1]].set(w)

    def pad_vec(v):
        v = jnp.reshape(v, (-1,))
        return jnp.zeros((P,), f32).at[:v.shape[0]].set(v)

    wh_p = jnp.stack([pad_mat(w) for (w, _, _, _) in hidden])   # (L,128,128)
    wl_p = pad_mat(w_last)

    vec_rows = [pad_vec(b_first)]
    for (_, b, g, be) in hidden:
        vec_rows += [pad_vec(b), pad_vec(g), pad_vec(be)]
    vec_rows.append(pad_vec(b_last))
    vecs = jnp.stack(vec_rows)                                  # (2+3L, 128)

    return {
        "g_num": g_num, "g_cat": g_cat,
        "row_offsets": jnp.asarray(row_offsets, jnp.int32),
        "w_hidden": wh_p, "vecs": vecs, "w_last": wl_p,
        "num_hidden": len(hidden), "hidden_real": h0, "emb_dim": emb_dim,
        "n_numeric": n_numeric,
    }


# ------------------------------- wrapper ------------------------------------

def stupid_model_embed_forward(x_numeric, x_categorical, packed):
    """x_numeric: (B, n_num) float32, x_categorical: (B, n_cat) int32."""
    B, n_num = x_numeric.shape
    assert n_num == packed["n_numeric"]
    n_tables = int(packed["row_offsets"].shape[0])
    L = packed["num_hidden"]
    P = _LANE
    emb_dim = packed["emb_dim"]
    r_total = int(packed["g_cat"].shape[0])

    # Pack the streaming input: numeric features + (offset) indices as exact
    # small-int floats -> one lane-dense DMA per grid step.
    idx = x_categorical.astype(jnp.int32) + packed["row_offsets"][None, :]
    xin = jnp.concatenate(
        [x_numeric.astype(jnp.float32), idx.astype(jnp.float32)], axis=1)

    # >= 2 grid steps whenever B > 8 so v7x's two TensorCores both get work;
    # 1024 cap keeps streaming double-buffers tiny even under v5e's default
    # 16 MiB scoped-VMEM limit.
    tm = min(1024, max(8, _round_up(pl.cdiv(B, 2), 8)))
    grid = (pl.cdiv(B, tm),)

    args = [xin, packed["g_num"], packed["g_cat"], packed["w_hidden"],
            packed["vecs"], packed["w_last"]]

    resident2 = lambda i: (0, 0)
    in_specs = [
        pl.BlockSpec((tm, n_num + n_tables), lambda i: (i, 0)),   # streams
        pl.BlockSpec(packed["g_num"].shape, resident2),
        pl.BlockSpec(packed["g_cat"].shape, resident2),
        pl.BlockSpec((L, P, P), lambda i: (0, 0, 0)),
        pl.BlockSpec(packed["vecs"].shape, resident2),
        pl.BlockSpec((P, P), resident2),
    ]
    out_spec = pl.BlockSpec((tm, P), lambda i: (i, 0))

    # Advisory cost estimate so XLA schedules around this latency-bound call.
    flops = int(2 * B * P * (n_num + r_total + P * (1 + L)))
    bytes_accessed = int(sum(a.size * a.dtype.itemsize for a in args) + B * P * 4)
    cost = pl.CostEstimate(flops=flops,
                           transcendentals=int(B * (P * (1 + L) + L + 1)),
                           bytes_accessed=bytes_accessed)

    out = pl.pallas_call(
        _make_kernel(n_tables, n_num, L, packed["hidden_real"]),
        out_shape=jax.ShapeDtypeStruct((B, P), jnp.float32),
        grid_spec=pltpu.PrefetchScalarGridSpec(
            num_scalar_prefetch=0, grid=grid,
            in_specs=in_specs, out_specs=out_spec),
        compiler_params=pltpu.CompilerParams(dimension_semantics=("parallel",)),
        cost_estimate=cost,
    )(*args)
    return out[:, :emb_dim]   # drop the zero lane-padding


# ----------------------- deterministic parameter init -----------------------

def init_params(key, n_numeric, num_embeddings, embedding_dim,
                hidden_dims, emb_dim):
    in_shape = n_numeric + sum(embedding_dim)

    def linear(k, fan_in, fan_out):
        kw, kb = jax.random.split(k)
        bound = 1.0 / jnp.sqrt(fan_in)
        w = jax.random.uniform(kw, (fan_in, fan_out), jnp.float32, -bound, bound)
        b = jax.random.uniform(kb, (fan_out,), jnp.float32, -bound, bound)
        return w, b

    keys = jax.random.split(key, 2 + len(num_embeddings) + len(hidden_dims))
    ki = iter(keys)

    emb_tables = [
        jax.random.normal(next(ki), (num_embeddings[i] + 1, embedding_dim[i]),
                          jnp.float32)
        for i in range(len(num_embeddings))
    ]
    w_first, b_first = linear(next(ki), in_shape, hidden_dims[0])

    hidden = []
    for i in range(len(hidden_dims) - 1):
        w, b = linear(next(ki), hidden_dims[i], hidden_dims[i + 1])
        gamma = jnp.ones((hidden_dims[i + 1],), jnp.float32)   # LayerNorm weight
        beta = jnp.zeros((hidden_dims[i + 1],), jnp.float32)   # LayerNorm bias
        hidden.append((w, b, gamma, beta))

    w_last, b_last = linear(next(ki), hidden_dims[-1], emb_dim)
    return {"emb_tables": emb_tables, "w_first": w_first, "b_first": b_first,
            "hidden": hidden, "w_last": w_last, "b_last": b_last}


# --------------------------- pure-JAX reference ------------------------------

def reference_forward(x_numeric, x_categorical, params):
    hp = jax.lax.Precision.HIGHEST
    embedded = [tbl[x_categorical[:, i].astype(jnp.int32)]
                for i, tbl in enumerate(params["emb_tables"])]
    h = jnp.concatenate([x_numeric] + embedded, axis=1).astype(jnp.float32)
    h = _gelu_exact(jnp.dot(h, params["w_first"], precision=hp) + params["b_first"])
    for (w, b, g, be) in params["hidden"]:
        h = jnp.dot(h, w, precision=hp) + b
        mean = jnp.mean(h, axis=-1, keepdims=True)
        var = jnp.mean(jnp.square(h - mean), axis=-1, keepdims=True)
        h = (h - mean) * jax.lax.rsqrt(var + 1e-5) * g + be
        h = _gelu_exact(h)
    y = jnp.dot(h, params["w_last"], precision=hp) + params["b_last"]
    nrm = jnp.sqrt(jnp.sum(y * y, axis=-1, keepdims=True))
    return y / jnp.maximum(nrm, 1e-12)


# --------------------------------- main --------------------------------------

if __name__ == "__main__":
    # Module hyper-params (small, consistent with the forward pass):
    #   numeric features = 4, categorical features = 2
    #   num_embeddings = [10, 20], embedding_dim = [8, 16]
    #   in_shape = 4 + 8 + 16 = 28, hidden_dims = [32, 32, 32], emb_dim = 16
    n_numeric = 4
    num_embeddings = [10, 20]
    embedding_dim = [8, 16]
    hidden_dims = [32, 32, 32]
    emb_dim = 16

    key = jax.random.PRNGKey(0)
    k_params, k_num, k_cat = jax.random.split(key, 3)

    params = init_params(k_params, n_numeric, num_embeddings, embedding_dim,
                         hidden_dims, emb_dim)
    packed = pack_params(params, n_numeric)   # one-time packing / folding

    def make_inputs(batch, salt):
        xn = jax.random.normal(jax.random.fold_in(k_num, salt),
                               (batch, n_numeric), jnp.float32)
        xc = jnp.stack(
            [jax.random.randint(jax.random.fold_in(k_cat, salt * 100 + i),
                                (batch,), 0, num_embeddings[i] + 1)
             for i in range(len(num_embeddings))], axis=1).astype(jnp.int32)
        return xn, xc

    # Primary small-batch check.
    batch = 8
    x_numeric, x_categorical = make_inputs(batch, 0)
    out = stupid_model_embed_forward(x_numeric, x_categorical, packed)
    out = jax.block_until_ready(out)
    ref = reference_forward(x_numeric, x_categorical, params)
    assert out.shape == (batch, emb_dim)
    assert jnp.allclose(out, ref, atol=1e-4, rtol=1e-4), "mismatch vs reference"

    # Multi-tile + remainder path (B > tm, B % tm != 0): grid=(2,), last step partial.
    batch2 = 20
    x_numeric2, x_categorical2 = make_inputs(batch2, 1)
    out2 = stupid_model_embed_forward(x_numeric2, x_categorical2, packed)
    out2 = jax.block_until_ready(out2)
    ref2 = reference_forward(x_numeric2, x_categorical2, params)
    assert out2.shape == (batch2, emb_dim)
    assert jnp.allclose(out2, ref2, atol=1e-4, rtol=1e-4), "mismatch (remainder)"

    print("KERNEL_OK")
</pallas_src>

<mosaic_0001>
module attributes {stable_mosaic.version = 11 : i64} {
  func.func @kernel(%arg0: i32, %arg1: memref<8x6xf32, #tpu.memory_space<vmem>>, %arg2: memref<4x128xf32, #tpu.memory_space<vmem>>, %arg3: memref<32x128xf32, #tpu.memory_space<vmem>>, %arg4: memref<2x128x128xf32, #tpu.memory_space<vmem>>, %arg5: memref<8x128xf32, #tpu.memory_space<vmem>>, %arg6: memref<128x128xf32, #tpu.memory_space<vmem>>, %arg7: memref<8x128xf32, #tpu.memory_space<vmem>>) attributes {dimension_semantics = [#tpu.dimension_semantics<parallel>], iteration_bounds = array<i64: 1>, scalar_prefetch = 0 : i64, scratch_operands = 0 : i64, tpu.core_type = #tpu.core_type<tc>, window_params = [{transform_indices = @transform_0, window_bounds = array<i64: 8, 6>}, {pipeline_mode = #tpu.pipeline_mode<synchronous>, transform_indices = @transform_1, window_bounds = array<i64: 4, 128>}, {pipeline_mode = #tpu.pipeline_mode<synchronous>, transform_indices = @transform_2, window_bounds = array<i64: 32, 128>}, {pipeline_mode = #tpu.pipeline_mode<synchronous>, transform_indices = @transform_3, window_bounds = array<i64: 2, 128, 128>}, {pipeline_mode = #tpu.pipeline_mode<synchronous>, transform_indices = @transform_4, window_bounds = array<i64: 8, 128>}, {pipeline_mode = #tpu.pipeline_mode<synchronous>, transform_indices = @transform_5, window_bounds = array<i64: 128, 128>}, {transform_indices = @transform_6, window_bounds = array<i64: 8, 128>}]} {
    %c0 = arith.constant 0 : index
    %c0_0 = arith.constant 0 : index
    %0 = vector.load %arg1[%c0, %c0_0] : memref<8x6xf32, #tpu.memory_space<vmem>>, vector<8x6xf32>
    %1 = vector.extract_strided_slice %0 {offsets = [0, 0], sizes = [8, 4], strides = [1, 1]} : vector<8x6xf32> to vector<8x4xf32>
    %2 = vector.extract_strided_slice %0 {offsets = [0, 4], sizes = [8, 2], strides = [1, 1]} : vector<8x6xf32> to vector<8x2xf32>
    %3 = arith.fptosi %2 : vector<8x2xf32> to vector<8x2xi32>
    %4 = tpu.iota {dimensions = array<i32: 1>} : vector<8x32xi32>
    %5 = vector.extract_strided_slice %3 {offsets = [0, 0], sizes = [8, 1], strides = [1, 1]} : vector<8x2xi32> to vector<8x1xi32>
    %6 = vector.broadcast %5 : vector<8x1xi32> to vector<8x32xi32>
    %7 = arith.cmpi eq, %4, %6 : vector<8x32xi32>
    %8 = arith.extui %7 : vector<8x32xi1> to vector<8x32xi32>
    %9 = arith.sitofp %8 : vector<8x32xi32> to vector<8x32xf32>
    %10 = vector.extract_strided_slice %3 {offsets = [0, 1], sizes = [8, 1], strides = [1, 1]} : vector<8x2xi32> to vector<8x1xi32>
    %11 = vector.broadcast %10 : vector<8x1xi32> to vector<8x32xi32>
    %12 = arith.cmpi eq, %4, %11 : vector<8x32xi32>
    %13 = arith.extui %12 : vector<8x32xi1> to vector<8x32xi32>
    %14 = arith.sitofp %13 : vector<8x32xi32> to vector<8x32xf32>
    %15 = arith.addf %9, %14 : vector<8x32xf32>
    %c0_1 = arith.constant 0 : index
    %c0_2 = arith.constant 0 : index
    %16 = vector.load %arg2[%c0_1, %c0_2] : memref<4x128xf32, #tpu.memory_space<vmem>>, vector<4x128xf32>
    %cst = arith.constant dense<0.000000e+00> : vector<8x128xf32>
    %17 = tpu.matmul %1, %16, %cst {dimension_numbers = #tpu.dot_dimension_numbers<[1], [0], [0], [1], [0, 0, 1, 1], [], []>} : vector<8x4xf32>, vector<4x128xf32>, vector<8x128xf32> -> vector<8x128xf32>
    %c0_3 = arith.constant 0 : index
    %c0_4 = arith.constant 0 : index
    %18 = vector.load %arg3[%c0_3, %c0_4] : memref<32x128xf32, #tpu.memory_space<vmem>>, vector<32x128xf32>
    %cst_5 = arith.constant dense<0.000000e+00> : vector<8x128xf32>
    %19 = tpu.matmul %15, %18, %cst_5 {dimension_numbers = #tpu.dot_dimension_numbers<[1], [0], [0], [1], [0, 0, 1, 1], [], []>} : vector<8x32xf32>, vector<32x128xf32>, vector<8x128xf32> -> vector<8x128xf32>
    %20 = arith.addf %17, %19 : vector<8x128xf32>
    %c0_6 = arith.constant 0 : index
    %c0_7 = arith.constant 0 : index
    %21 = vector.load %arg5[%c0_6, %c0_7] : memref<8x128xf32, #tpu.memory_space<vmem>>, vector<1x128xf32>
    %22 = vector.broadcast %21 : vector<1x128xf32> to vector<8x128xf32>
    %23 = arith.addf %20, %22 : vector<8x128xf32>
    %cst_8 = arith.constant 5.000000e-01 : f32
    %24 = vector.broadcast %cst_8 : f32 to vector<8x128xf32>
    %25 = arith.mulf %24, %23 : vector<8x128xf32>
    %cst_9 = arith.constant 0.707106769 : f32
    %26 = vector.broadcast %cst_9 : f32 to vector<8x128xf32>
    %27 = arith.mulf %23, %26 : vector<8x128xf32>
    %28 = math.erf %27 : vector<8x128xf32>
    %cst_10 = arith.constant 1.000000e+00 : f32
    %29 = vector.broadcast %cst_10 : f32 to vector<8x128xf32>
    %30 = arith.addf %29, %28 : vector<8x128xf32>
    %31 = arith.mulf %25, %30 : vector<8x128xf32>
    %c1 = arith.constant 1 : index
    %c0_11 = arith.constant 0 : index
    %32 = vector.load %arg5[%c1, %c0_11] : memref<8x128xf32, #tpu.memory_space<vmem>>, vector<1x128xf32>
    %c2 = arith.constant 2 : index
    %c0_12 = arith.constant 0 : index
    %33 = vector.load %arg5[%c2, %c0_12] : memref<8x128xf32, #tpu.memory_space<vmem>>, vector<1x128xf32>
    %c3 = arith.constant 3 : index
    %c0_13 = arith.constant 0 : index
    %34 = vector.load %arg5[%c3, %c0_13] : memref<8x128xf32, #tpu.memory_space<vmem>>, vector<1x128xf32>
    %c0_14 = arith.constant 0 : index
    %c0_15 = arith.constant 0 : index
    %c0_16 = arith.constant 0 : index
    %35 = vector.load %arg4[%c0_14, %c0_15, %c0_16] : memref<2x128x128xf32, #tpu.memory_space<vmem>>, vector<1x128x128xf32>
    %36 = vector.shape_cast %35 : vector<1x128x128xf32> to vector<128x128xf32>
    %cst_17 = arith.constant dense<0.000000e+00> : vector<8x128xf32>
    %37 = tpu.matmul %31, %36, %cst_17 {dimension_numbers = #tpu.dot_dimension_numbers<[1], [0], [0], [1], [0, 0, 1, 1], [], []>} : vector<8x128xf32>, vector<128x128xf32>, vector<8x128xf32> -> vector<8x128xf32>
    %38 = vector.broadcast %32 : vector<1x128xf32> to vector<8x128xf32>
    %39 = arith.addf %37, %38 : vector<8x128xf32>
    %cst_18 = arith.constant dense<0.000000e+00> : vector<8xf32>
    %40 = vector.multi_reduction <add>, %39, %cst_18 [1] : vector<8x128xf32> to vector<8xf32>
    %41 = vector.shape_cast %40 : vector<8xf32> to vector<8x1xf32>
    %42 = arith.mulf %39, %39 : vector<8x128xf32>
    %cst_19 = arith.constant dense<0.000000e+00> : vector<8xf32>
    %43 = vector.multi_reduction <add>, %42, %cst_19 [1] : vector<8x128xf32> to vector<8xf32>
    %44 = vector.shape_cast %43 : vector<8xf32> to vector<8x1xf32>
    %cst_20 = arith.constant 3.125000e-02 : f32
    %45 = vector.broadcast %cst_20 : f32 to vector<8x1xf32>
    %46 = arith.mulf %41, %45 : vector<8x1xf32>
    %cst_21 = arith.constant 3.125000e-02 : f32
    %47 = vector.broadcast %cst_21 : f32 to vector<8x1xf32>
    %48 = arith.mulf %44, %47 : vector<8x1xf32>
    %49 = arith.mulf %46, %46 : vector<8x1xf32>
    %50 = arith.subf %48, %49 : vector<8x1xf32>
    %cst_22 = arith.constant 0.000000e+00 : f32
    %51 = vector.broadcast %cst_22 : f32 to vector<8x1xf32>
    %52 = arith.maximumf %50, %51 : vector<8x1xf32>
    %53 = vector.broadcast %46 : vector<8x1xf32> to vector<8x128xf32>
    %54 = arith.subf %39, %53 : vector<8x128xf32>
    %cst_23 = arith.constant 9.99999974E-6 : f32
    %55 = vector.broadcast %cst_23 : f32 to vector<8x1xf32>
    %56 = arith.addf %52, %55 : vector<8x1xf32>
    %57 = math.rsqrt %56 : vector<8x1xf32>
    %58 = vector.broadcast %57 : vector<8x1xf32> to vector<8x128xf32>
    %59 = arith.mulf %54, %58 : vector<8x128xf32>
    %60 = vector.broadcast %33 : vector<1x128xf32> to vector<8x128xf32>
    %61 = arith.mulf %59, %60 : vector<8x128xf32>
    %62 = vector.broadcast %34 : vector<1x128xf32> to vector<8x128xf32>
    %63 = arith.addf %61, %62 : vector<8x128xf32>
    %cst_24 = arith.constant 5.000000e-01 : f32
    %64 = vector.broadcast %cst_24 : f32 to vector<8x128xf32>
    %65 = arith.mulf %64, %63 : vector<8x128xf32>
    %cst_25 = arith.constant 0.707106769 : f32
    %66 = vector.broadcast %cst_25 : f32 to vector<8x128xf32>
    %67 = arith.mulf %63, %66 : vector<8x128xf32>
    %68 = math.erf %67 : vector<8x128xf32>
    %cst_26 = arith.constant 1.000000e+00 : f32
    %69 = vector.broadcast %cst_26 : f32 to vector<8x128xf32>
    %70 = arith.addf %69, %68 : vector<8x128xf32>
    %71 = arith.mulf %65, %70 : vector<8x128xf32>
    %c4 = arith.constant 4 : index
    %c0_27 = arith.constant 0 : index
    %72 = vector.load %arg5[%c4, %c0_27] : memref<8x128xf32, #tpu.memory_space<vmem>>, vector<1x128xf32>
    %c5 = arith.constant 5 : index
    %c0_28 = arith.constant 0 : index
    %73 = vector.load %arg5[%c5, %c0_28] : memref<8x128xf32, #tpu.memory_space<vmem>>, vector<1x128xf32>
    %c6 = arith.constant 6 : index
    %c0_29 = arith.constant 0 : index
    %74 = vector.load %arg5[%c6, %c0_29] : memref<8x128xf32, #tpu.memory_space<vmem>>, vector<1x128xf32>
    %c1_30 = arith.constant 1 : index
    %c0_31 = arith.constant 0 : index
    %c0_32 = arith.constant 0 : index
    %75 = vector.load %arg4[%c1_30, %c0_31, %c0_32] : memref<2x128x128xf32, #tpu.memory_space<vmem>>, vector<1x128x128xf32>
    %76 = vector.shape_cast %75 : vector<1x128x128xf32> to vector<128x128xf32>
    %cst_33 = arith.constant dense<0.000000e+00> : vector<8x128xf32>
    %77 = tpu.matmul %71, %76, %cst_33 {dimension_numbers = #tpu.dot_dimension_numbers<[1], [0], [0], [1], [0, 0, 1, 1], [], []>} : vector<8x128xf32>, vector<128x128xf32>, vector<8x128xf32> -> vector<8x128xf32>
    %78 = vector.broadcast %72 : vector<1x128xf32> to vector<8x128xf32>
    %79 = arith.addf %77, %78 : vector<8x128xf32>
    %cst_34 = arith.constant dense<0.000000e+00> : vector<8xf32>
    %80 = vector.multi_reduction <add>, %79, %cst_34 [1] : vector<8x128xf32> to vector<8xf32>
    %81 = vector.shape_cast %80 : vector<8xf32> to vector<8x1xf32>
    %82 = arith.mulf %79, %79 : vector<8x128xf32>
    %cst_35 = arith.constant dense<0.000000e+00> : vector<8xf32>
    %83 = vector.multi_reduction <add>, %82, %cst_35 [1] : vector<8x128xf32> to vector<8xf32>
    %84 = vector.shape_cast %83 : vector<8xf32> to vector<8x1xf32>
    %cst_36 = arith.constant 3.125000e-02 : f32
    %85 = vector.broadcast %cst_36 : f32 to vector<8x1xf32>
    %86 = arith.mulf %81, %85 : vector<8x1xf32>
    %cst_37 = arith.constant 3.125000e-02 : f32
    %87 = vector.broadcast %cst_37 : f32 to vector<8x1xf32>
    %88 = arith.mulf %84, %87 : vector<8x1xf32>
    %89 = arith.mulf %86, %86 : vector<8x1xf32>
    %90 = arith.subf %88, %89 : vector<8x1xf32>
    %cst_38 = arith.constant 0.000000e+00 : f32
    %91 = vector.broadcast %cst_38 : f32 to vector<8x1xf32>
    %92 = arith.maximumf %90, %91 : vector<8x1xf32>
    %93 = vector.broadcast %86 : vector<8x1xf32> to vector<8x128xf32>
    %94 = arith.subf %79, %93 : vector<8x128xf32>
    %cst_39 = arith.constant 9.99999974E-6 : f32
    %95 = vector.broadcast %cst_39 : f32 to vector<8x1xf32>
    %96 = arith.addf %92, %95 : vector<8x1xf32>
    %97 = math.rsqrt %96 : vector<8x1xf32>
    %98 = vector.broadcast %97 : vector<8x1xf32> to vector<8x128xf32>
    %99 = arith.mulf %94, %98 : vector<8x128xf32>
    %100 = vector.broadcast %73 : vector<1x128xf32> to vector<8x128xf32>
    %101 = arith.mulf %99, %100 : vector<8x128xf32>
    %102 = vector.broadcast %74 : vector<1x128xf32> to vector<8x128xf32>
    %103 = arith.addf %101, %102 : vector<8x128xf32>
    %cst_40 = arith.constant 5.000000e-01 : f32
    %104 = vector.broadcast %cst_40 : f32 to vector<8x128xf32>
    %105 = arith.mulf %104, %103 : vector<8x128xf32>
    %cst_41 = arith.constant 0.707106769 : f32
    %106 = vector.broadcast %cst_41 : f32 to vector<8x128xf32>
    %107 = arith.mulf %103, %106 : vector<8x128xf32>
    %108 = math.erf %107 : vector<8x128xf32>
    %cst_42 = arith.constant 1.000000e+00 : f32
    %109 = vector.broadcast %cst_42 : f32 to vector<8x128xf32>
    %110 = arith.addf %109, %108 : vector<8x128xf32>
    %111 = arith.mulf %105, %110 : vector<8x128xf32>
    %c0_43 = arith.constant 0 : index
    %c0_44 = arith.constant 0 : index
    %112 = vector.load %arg6[%c0_43, %c0_44] : memref<128x128xf32, #tpu.memory_space<vmem>>, vector<128x128xf32>
    %cst_45 = arith.constant dense<0.000000e+00> : vector<8x128xf32>
    %113 = tpu.matmul %111, %112, %cst_45 {dimension_numbers = #tpu.dot_dimension_numbers<[1], [0], [0], [1], [0, 0, 1, 1], [], []>} : vector<8x128xf32>, vector<128x128xf32>, vector<8x128xf32> -> vector<8x128xf32>
    %c7 = arith.constant 7 : index
    %c0_46 = arith.constant 0 : index
    %114 = vector.load %arg5[%c7, %c0_46] : memref<8x128xf32, #tpu.memory_space<vmem>>, vector<1x128xf32>
    %115 = vector.broadcast %114 : vector<1x128xf32> to vector<8x128xf32>
    %116 = arith.addf %113, %115 : vector<8x128xf32>
    %117 = arith.mulf %116, %116 : vector<8x128xf32>
    %cst_47 = arith.constant dense<0.000000e+00> : vector<8xf32>
    %118 = vector.multi_reduction <add>, %117, %cst_47 [1] : vector<8x128xf32> to vector<8xf32>
    %119 = vector.shape_cast %118 : vector<8xf32> to vector<8x1xf32>
    %cst_48 = arith.constant 1.000000e-24 : f32
    %120 = vector.broadcast %cst_48 : f32 to vector<8x1xf32>
    %121 = arith.maximumf %119, %120 : vector<8x1xf32>
    %122 = math.rsqrt %121 : vector<8x1xf32>
    %123 = vector.broadcast %122 : vector<8x1xf32> to vector<8x128xf32>
    %124 = arith.mulf %116, %123 : vector<8x128xf32>
    %c0_49 = arith.constant 0 : index
    %c0_50 = arith.constant 0 : index
    %125 = vector.load %arg7[%c0_49, %c0_50] : memref<8x128xf32, #tpu.memory_space<vmem>>, vector<8x128xf32>
    tpu.vector_store %arg7[%c0_49, %c0_50], %124 {strides = array<i32>} : memref<8x128xf32, #tpu.memory_space<vmem>>, vector<8x128xf32>,
    return
  }
  func.func @transform_0(%arg0: i32) -> (i32, i32) {
    %c0_i32 = arith.constant 0 : i32
    %c0_i32_0 = arith.constant 0 : i32
    return %arg0, %c0_i32 : i32, i32
  }
  func.func @transform_1(%arg0: i32) -> (i32, i32) {
    %c0_i32 = arith.constant 0 : i32
    %c0_i32_0 = arith.constant 0 : i32
    %c0_i32_1 = arith.constant 0 : i32
    return %c0_i32, %c0_i32_0 : i32, i32
  }
  func.func @transform_2(%arg0: i32) -> (i32, i32) {
    %c0_i32 = arith.constant 0 : i32
    %c0_i32_0 = arith.constant 0 : i32
    %c0_i32_1 = arith.constant 0 : i32
    return %c0_i32, %c0_i32_0 : i32, i32
  }
  func.func @transform_3(%arg0: i32) -> (i32, i32, i32) {
    %c0_i32 = arith.constant 0 : i32
    %c0_i32_0 = arith.constant 0 : i32
    %c0_i32_1 = arith.constant 0 : i32
    %c0_i32_2 = arith.constant 0 : i32
    return %c0_i32, %c0_i32_0, %c0_i32_1 : i32, i32, i32
  }
  func.func @transform_4(%arg0: i32) -> (i32, i32) {
    %c0_i32 = arith.constant 0 : i32
    %c0_i32_0 = arith.constant 0 : i32
    %c0_i32_1 = arith.constant 0 : i32
    return %c0_i32, %c0_i32_0 : i32, i32
  }
  func.func @transform_5(%arg0: i32) -> (i32, i32) {
    %c0_i32 = arith.constant 0 : i32
    %c0_i32_0 = arith.constant 0 : i32
    %c0_i32_1 = arith.constant 0 : i32
    return %c0_i32, %c0_i32_0 : i32, i32
  }
  func.func @transform_6(%arg0: i32) -> (i32, i32) {
    %c0_i32 = arith.constant 0 : i32
    %c0_i32_0 = arith.constant 0 : i32
    return %arg0, %c0_i32 : i32, i32
  }
}

</mosaic_0001>

<bundles_post_ra>
// kernel: tpu_custom_call.1
= control target key start
LH: loop header
LB: loop body
LE: loop exit
PB: predicated region body
PF: predicated region fallthrough
CT: control target
= control target key end

     0   :  { %11 = vsyncpa [#allocation3], 0  ;;  %s1172_s0 = inlined_call_operand.hbm [shape: f32[8,6], index: 0, kind: input, shape index: {}]   ;;  %s1173_s1 = inlined_call_operand.hbm [shape: f32[4,128], index: 1, kind: input, shape index: {}]   ;;  %s1174_s2 = inlined_call_operand.hbm [shape: f32[32,128], index: 2, kind: input, shape index: {}]   ;;  %s1175_s3 = inlined_call_operand.hbm [shape: f32[2,128,128], index: 3, kind: input, shape index: {}]   ;;  %s1176_s4 = inlined_call_operand.hbm [shape: f32[8,128], index: 4, kind: input, shape index: {}]   ;;  %s1177_s5 = inlined_call_operand.hbm [shape: f32[128,128], index: 5, kind: input, shape index: {}]   ;;  %s1178_s6 = inlined_call_operand.hbm [shape: f32[8,128], index: 6, kind: output, shape index: {}]  }
   0x1   :  { %12 = vsyncpa [#allocation6], 0 }
   0x2   :  { %13 = vsyncpa [#allocation9], 0 }
   0x3   :  { %14 = vsyncpa [#allocation12], 0 }
   0x4   :  { %15 = vsyncpa [#allocation4], 0  ;;  %s1017_s21 = smov [#allocation5]  }
   0x5   :  { %s32_s22 = sshll.u32 %s1017_s21, 4  ;;  %s33_s22 = int_to_ptr.vmem [resolvable:$true] %s32_s22 }
   0x6   :  { %s875_s23 = scalar_lea.vmem %s33_s22, 64  ;;  %p880_p1 = scmp.lt.s32.totalorder %s33_s22, %s33_s22 }
   0x7   :  { %p876_p0 = scmp.ne.s32.totalorder %s33_s22, %s875_s23  ;;  %p881_p2 = scmp.lt.s32.totalorder %s875_s23, %s875_s23 }
   0x9   :  { %p882_p3 = por %p881_p2, %p880_p1 }
   0xb   :  { %p883_p4 = pnand %p882_p3, %p876_p0 }
   0xd   :  { %886 = shalt.err (!%p883_p4)
}
   0xe   :  { %35 = dma.hbm_to_vmem [thread:$0]  %s1173_s1, 64, %s33_s22, [#allocation6]  }
   0xf   :  { %s1018_s26 = smov [#allocation8]   ;;  %s1019_s28 = smov [#allocation2]  }
  0x10   :  { %s53_s27 = sshll.u32 %s1018_s26, 4  ;;  %s22_s29 = sshll.u32 %s1019_s28, 4  ;;  %s54_s27 = int_to_ptr.vmem [resolvable:$true] %s53_s27  ;;  %s23_s29 = int_to_ptr.vmem [resolvable:$true] %s22_s29 }
  0x11   :  { %s895_s30 = scalar_lea.vmem %s54_s27, 4096  ;;  %p900_p6 = scmp.lt.s32.totalorder %s54_s27, %s54_s27 }
  0x12   :  { %p896_p5 = scmp.ne.s32.totalorder %s54_s27, %s895_s30  ;;  %p901_p7 = scmp.lt.s32.totalorder %s895_s30, %s895_s30 }
  0x14   :  { %p902_p8 = por %p901_p7, %p900_p6 }
  0x16   :  { %p903_p9 = pnand %p902_p8, %p896_p5 }
  0x18   :  { %906 = shalt.err (!%p903_p9)
}
  0x19   :  { %s1020_s7 = smov 128   ;;  %s1021_s8 = smov 8  }
  0x1a   :  { %59 = dma.hbm_to_vmem [thread:$0]  %s1175_s3, 4096, %s54_s27, [#allocation9], %s1020_s7, %s1020_s7, %s1021_s8  }
  0x1b   :  { %s915_s1 = scalar_lea.vmem %s23_s29, 128  ;;  %p920_p11 = scmp.lt.s32.totalorder %s23_s29, %s23_s29 }
  0x1c   :  { %p916_p10 = scmp.ne.s32.totalorder %s23_s29, %s915_s1  ;;  %p921_p12 = scmp.lt.s32.totalorder %s915_s1, %s915_s1 }
  0x1e   :  { %p922_p13 = por %p921_p12, %p920_p11 }
  0x20   :  { %p923_p0 = pnand %p922_p13, %p916_p10 }
  0x22   :  { %926 = shalt.err (!%p923_p0)
}
  0x23   :  { %25 = dma.hbm_to_vmem [thread:$0]  %s1172_s0, 128, %s23_s29, [#allocation3]  }
  0x24   :  { %s1022_s13 = smov [#allocation7]   ;;  %s1023_s15 = smov [#allocation10]  }
  0x25   :  { %s41_s14 = sshll.u32 %s1022_s13, 4  ;;  %s66_s16 = sshll.u32 %s1023_s15, 4  ;;  %s42_s14 = int_to_ptr.vmem [resolvable:$true] %s41_s14  ;;  %s67_s16 = int_to_ptr.vmem [resolvable:$true] %s66_s16 }
  0x26   :  { %s935_s17 = scalar_lea.vmem %s42_s14, 512  ;;  %p940_p2 = scmp.lt.s32.totalorder %s42_s14, %s42_s14 }
  0x27   :  { %p936_p1 = scmp.ne.s32.totalorder %s42_s14, %s935_s17  ;;  %p941_p3 = scmp.lt.s32.totalorder %s935_s17, %s935_s17 }
  0x29   :  { %p942_p4 = por %p941_p3, %p940_p2 }
  0x2b   :  { %p943_p5 = pnand %p942_p4, %p936_p1 }
  0x2d   :  { %946 = shalt.err (!%p943_p5)
}
  0x2e   :  { %47 = dma.hbm_to_vmem [thread:$0]  %s1174_s2, 512, %s42_s14, [#allocation6], %s1020_s7, %s1020_s7, %s1021_s8  }
  0x2f   :  { %s955_s0 = scalar_lea.vmem %s67_s16, 128  ;;  %p960_p7 = scmp.lt.s32.totalorder %s67_s16, %s67_s16 }
  0x30   :  { %p956_p6 = scmp.ne.s32.totalorder %s67_s16, %s955_s0  ;;  %p961_p8 = scmp.lt.s32.totalorder %s955_s0, %s955_s0 }
  0x32   :  { %p962_p9 = por %p961_p8, %p960_p7 }
  0x34   :  { %p963_p10 = pnand %p962_p9, %p956_p6 }
  0x36   :  { %966 = shalt.err (!%p963_p10)
}
  0x37   :  { %69 = dma.hbm_to_vmem [thread:$0]  %s1176_s4, 128, %s67_s16, [#allocation9]  }
  0x38   :  { %s1024_s21 = smov [#allocation11]  }
  0x39   :  { %s75_s22 = sshll.u32 %s1024_s21, 4  ;;  %s76_s22 = int_to_ptr.vmem [resolvable:$true] %s75_s22 }
  0x3a   :  { %s975_s23 = scalar_lea.vmem %s76_s22, 2048  ;;  %p980_p12 = scmp.lt.s32.totalorder %s76_s22, %s76_s22 }
  0x3b   :  { %p976_p11 = scmp.ne.s32.totalorder %s76_s22, %s975_s23  ;;  %p981_p13 = scmp.lt.s32.totalorder %s975_s23, %s975_s23 }
  0x3d   :  { %p982_p0 = por %p981_p13, %p980_p12 }
  0x3f   :  { %p983_p1 = pnand %p982_p0, %p976_p11 }
  0x41   :  { %986 = shalt.err (!%p983_p1)
}
  0x42   :  { %81 = dma.hbm_to_vmem [thread:$0]  %s1177_s5, 2048, %s76_s22, [#allocation12], %s1020_s7, %s1020_s7, %s1021_s8  }
  0x43   :  { %1007 = dma.done.wait [#allocation3], 128  }
  0x44   :  { %1008 = vsyncadd [#allocation3], 4294967168 }
  0x45   :  { %1009 = dma.done.wait [#allocation6], 576  }
  0x46   :  { %1010 = vsyncadd [#allocation6], 4294966720 }
  0x47   :  { %1011 = dma.done.wait [#allocation9], 4224  }
  0x48   :  { %1012 = vsyncadd [#allocation9], 4294963072 }
  0x49   :  { %1013 = dma.done.wait [#allocation12], 2048  }
  0x4a   :  { %1014 = vsyncadd [#allocation12], 4294965248  ;;  %v1025_v0 = vmov 4   ;;  %v1026_v1 = vmov 0.0   ;;  %v100_v2 = vld [vmem:[#allocation2] sm:$0xff]  ;;  %v119_v7 = vld [vmem:[#allocation7 + $0x8] sm:$0xff]  ;;  %v102_v11 = vlaneseq }
  0x4b   :  { %853 = vset.pattern.permute.xlu0 %v1025_v0  ;;  %717 = vmatprep.subr.mxu0 %v1026_v1  ;;  %v838_v3 = vtrunc.f32 %v100_v2  ;;  %v121_v4 = vld [vmem:[#allocation7 + $0x18] sm:$0xff]  ;;  %v120_v5 = vld [vmem:[#allocation7 + $0x10] sm:$0xff]  ;;  %v118_v8 = vld [vmem:[#allocation7] sm:$0xff]  ;;  %v1027_v9 = vmov 5   ;;  %vm1028_vm0 = vmmov 0   ;;  %vm122_vm3 = vcmask 261120  }
  0x4c   :  { %733 = vmatprep.subr.mxu1 %v1026_v1  ;;  %718 = vmatpush3.msra.mxu0 %v121_v4  ;;  %v303_v10 = vld [vmem:[#allocation8 + $0x78] sm:$0xff]  ;;  %v103_v12 = vand.u32 127, %v102_v11  ;;  %vm200_vm4 = vcmask 1043456   ;;  %vm196_vm5 = vcmask 31744   ;;  %v302_v19 = vld [vmem:[#allocation8 + $0x70] sm:$0xff]  ;;  %v301_v20 = vld [vmem:[#allocation8 + $0x68] sm:$0xff] }
  0x4d   :  { %v839_v6 = vcvt.f32.s32 %v838_v3  ;;  %719 = vmatprep.subr.mxu0 %v1026_v1  ;;  %725 = vmatprep.mubr.msk.f32.mxu0 %vm1028_vm0, %v1026_v1  ;;  %v117_v18 = vld [vmem:[#allocation5] sm:$0xf]  ;;  %v300_v21 = vld [vmem:[#allocation8 + $0x60] sm:$0xff]  ;;  %v298_v23 = vld [vmem:[#allocation8 + $0x50] sm:$0xff]  ;;  %s1029_s4 = smov [#allocation13]  }
  0x4e   :  { %720 = vmatpush3.msra.mxu0 %v120_v5  ;;  %765 = vmatprep.mubr.msk.f32.mxu1 %vm1028_vm0, %v1026_v1  ;;  %v299_v22 = vld [vmem:[#allocation8 + $0x58] sm:$0xff]  ;;  %v297_v24 = vld [vmem:[#allocation8 + $0x48] sm:$0xff]  ;;  %v296_v25 = vld [vmem:[#allocation8 + $0x40] sm:$0xff]  ;;  %s634_s5 = sshll.u32 %s1029_s4, 4  ;;  %s635_s5 = int_to_ptr.vmem [resolvable:$true] %s634_s5 }
  0x4f   :  { %105 = vperm.xlu0 %853, %v839_v6   ;;  %721 = vmatprep.subr.mxu0 %v1026_v1  ;;  %v295_v26 = vld [vmem:[#allocation8 + $0x38] sm:$0xff]  ;;  %v294_v27 = vld [vmem:[#allocation8 + $0x30] sm:$0xff]  ;;  %v293_v28 = vld [vmem:[#allocation8 + $0x28] sm:$0xff]  ;;  %s987_s25 = scalar_lea.vmem %s635_s5, 128  ;;  %p992_p3 = scmp.lt.s32.totalorder %s635_s5, %s635_s5 }
  0x50   :  { %722 = vmatpush3.msra.mxu0 %v119_v7  ;;  %734 = vmatpush3.msra.mxu1 %v303_v10  ;;  %v292_v29 = vld [vmem:[#allocation8 + $0x20] sm:$0xff]  ;;  %v291_v30 = vld [vmem:[#allocation8 + $0x18] sm:$0xff]  ;;  %v290_v31 = vld [vmem:[#allocation8 + $0x10] sm:$0xff]  ;;  %p988_p2 = scmp.ne.s32.totalorder %s635_s5, %s987_s25  ;;  %p993_p4 = scmp.lt.s32.totalorder %s987_s25, %s987_s25 }
  0x51   :  { %723 = vmatprep.subr.mxu0 %v1026_v1  ;;  %735 = vmatprep.subr.mxu1 %v1026_v1  ;;  %v289_v32 = vld [vmem:[#allocation8 + $0x8] sm:$0xff]  ;;  %v288_v33 = vld [vmem:[#allocation8] sm:$0xff]  ;;  %v426_v51 = vld [vmem:[#allocation8 + $0xf8] sm:$0xff] }
  0x52   :  { %724 = vmatpush3.msra.mxu0 %v118_v8  ;;  %736 = vmatpush3.msra.mxu1 %v302_v19  ;;  %v651_v37 = vld [vmem:[#allocation10] ss:$0 sm:$0xff]  ;;  %v652_v46 = vld [vmem:[#allocation10 + $0x1] ss:$0 sm:$0xff]  ;;  %v425_v52 = vld [vmem:[#allocation8 + $0xf0] sm:$0xff]  ;;  %p994_p5 = por %p993_p4, %p992_p3 }
  0x53   :  { %854 = vset.pattern.permute.xlu0 %v1027_v9  ;;  %728 = vmatprep.subr.mxu0 %v1026_v1  ;;  %v424_v53 = vld [vmem:[#allocation8 + $0xe8] sm:$0xff]  ;;  %v423_v54 = vld [vmem:[#allocation8 + $0xe0] sm:$0xff]  ;;  %v422_v55 = vld [vmem:[#allocation8 + $0xd8] sm:$0xff] }
  0x54   :  { %111 = vperm.xlu0 %854, %v839_v6   ;;  %737 = vmatprep.subr.mxu1 %v1026_v1  ;;  %v421_v56 = vld [vmem:[#allocation8 + $0xd0] sm:$0xff]  ;;  %v420_v57 = vld [vmem:[#allocation8 + $0xc8] sm:$0xff]  ;;  %v419_v58 = vld [vmem:[#allocation8 + $0xc0] sm:$0xff]  ;;  %p995_p6 = pnand %p994_p5, %p988_p2 }
  0x55   :  { %738 = vmatpush3.msra.mxu1 %v301_v20  ;;  %v418_v59 = vld [vmem:[#allocation8 + $0xb8] sm:$0xff]  ;;  %v417_v60 = vld [vmem:[#allocation8 + $0xb0] sm:$0xff]  ;;  %v416_v61 = vld [vmem:[#allocation8 + $0xa8] sm:$0xff] }
  0x56   :  { %739 = vmatprep.subr.mxu1 %v1026_v1  ;;  %v415_v62 = vld [vmem:[#allocation8 + $0xa0] sm:$0xff]  ;;  %v414_v63 = vld [vmem:[#allocation8 + $0x98] sm:$0xff]  ;;  %v413_v0 = vld [vmem:[#allocation8 + $0x90] sm:$0xff] }
  0x57   :  { %740 = vmatpush3.msra.mxu1 %v300_v21  ;;  %v411_v3 = vld [vmem:[#allocation8 + $0x80] sm:$0xff] }
  0x58   :  { %741 = vmatprep.subr.mxu1 %v1026_v1 }
  0x59   :  { %742 = vmatpush3.msra.mxu1 %v299_v22 }
  0x5a   :  { %743 = vmatprep.subr.mxu1 %v1026_v1 }
  0x5b   :  { %744 = vmatpush3.msra.mxu1 %v298_v23 }
  0x5c   :  { %745 = vmatprep.subr.mxu1 %v1026_v1 }
  0x5d   :  { %746 = vmatpush3.msra.mxu1 %v297_v24  ;;  %v655_v24 = vld [vmem:[#allocation10 + $0x4] ss:$0 sm:$0xff] }
  0x5e   :  { %747 = vmatprep.subr.mxu1 %v1026_v1 }
  0x5f   :  { %748 = vmatpush3.msra.mxu1 %v296_v25 }
  0x60   :  { %749 = vmatprep.subr.mxu1 %v1026_v1 }
  0x61   :  { %750 = vmatpush3.msra.mxu1 %v295_v26 }
  0x62   :  { %751 = vmatprep.subr.mxu1 %v1026_v1 }
  0x63   :  { %752 = vmatpush3.msra.mxu1 %v294_v27 }
  0x64   :  { %753 = vmatprep.subr.mxu1 %v1026_v1 }
  0x65   :  { %754 = vmatpush3.msra.mxu1 %v293_v28 }
  0x66   :  { %755 = vmatprep.subr.mxu1 %v1026_v1 }
  0x67   :  { %756 = vmatpush3.msra.mxu1 %v292_v29  ;;  %v545_v29 = vld [vmem:[#allocation11 + $0x78] sm:$0xff] }
  0x68   :  { %757 = vmatprep.subr.mxu1 %v1026_v1 }
  0x69   :  { %758 = vmatpush3.msra.mxu1 %v291_v30  ;;  %v544_v30 = vld [vmem:[#allocation11 + $0x70] sm:$0xff] }
  0x6a   :  { %759 = vmatprep.subr.mxu1 %v1026_v1 }
  0x6b   :  { %760 = vmatpush3.msra.mxu1 %v290_v31  ;;  %v543_v31 = vld [vmem:[#allocation11 + $0x68] sm:$0xff] }
  0x6c   :  { %761 = vmatprep.subr.mxu1 %v1026_v1 }
  0x6d   :  { %762 = vmatpush3.msra.mxu1 %v289_v32  ;;  %v542_v32 = vld [vmem:[#allocation11 + $0x60] sm:$0xff] }
  0x6e   :  { %763 = vmatprep.subr.mxu1 %v1026_v1 }
  0x6f   :  { %764 = vmatpush3.msra.mxu1 %v288_v33  ;;  %v541_v33 = vld [vmem:[#allocation11 + $0x58] sm:$0xff] }
  0x70   :  { %803 = vmatprep.subr.mxu1 %v1026_v1 }
  0xca   :  { %v106_v13 = vpop.permute.xlu0 %105 }
  0xcb   :  { %vm107_vm1 = vcmp.eq.s32.totalorder %v103_v12, %v106_v13 }
  0xcc   :  { %v646_v15 = vsel %vm107_vm1, 1.0, %v1026_v1 }
  0xcf   :  { %v112_v14 = vpop.permute.xlu0 %111 }
  0xd0   :  { %vm113_vm2 = vcmp.eq.s32.totalorder %v103_v12, %v112_v14  ;;  %v653_v14 = vld [vmem:[#allocation10 + $0x2] ss:$0 sm:$0xff] }
  0xd1   :  { %v647_v16 = vsel %vm113_vm2, 1.0, %v1026_v1 }
  0xd2   :  { %v116_v17 = vadd.f32 %v647_v16, %v646_v15  ;;  %v654_v16 = vld [vmem:[#allocation10 + $0x3] ss:$0 sm:$0xff] }
  0xd4   :  { %726 = vmatmul.mubr.msk.f32.vlgmr.msra.gmra.mxu0 %vm122_vm3, %v116_v17 }
  0xd5   :  { %729 = vmatpush3.msk.msra.mxu0 %vm200_vm4, %v117_v18  ;;  %730 = vmatprep.mubr.msk.f32.mxu0 %vm1028_vm0, %v1026_v1 }
  0xd6   :  { %768 = vmatprep.subr.mxu0 %v1026_v1 }
  0xd8   :  { %731 = vmatmul.mubr.msk.f32.vlgmr.msra.gmra.mxu0 %vm196_vm5, %v100_v2  ;;  %v412_v2 = vld [vmem:[#allocation8 + $0x88] sm:$0xff] }
  0xd9   :  { %800 = vmatprep.mubr.msk.f32.mxu0 %vm1028_vm0, %v1026_v1  ;;  %769 = vmatpush3.msra.mxu0 %v426_v51 }
  0xda   :  { %770 = vmatprep.subr.mxu0 %v1026_v1 }
  0xdb   :  { %771 = vmatpush3.msra.mxu0 %v425_v52 }
  0xdc   :  { %772 = vmatprep.subr.mxu0 %v1026_v1 }
  0xdd   :  { %773 = vmatpush3.msra.mxu0 %v424_v53 }
  0xde   :  { %774 = vmatprep.subr.mxu0 %v1026_v1 }
  0xdf   :  { %775 = vmatpush3.msra.mxu0 %v423_v54 }
  0xe0   :  { %776 = vmatprep.subr.mxu0 %v1026_v1 }
  0xe1   :  { %777 = vmatpush3.msra.mxu0 %v422_v55  ;;  %v656_v55 = vld [vmem:[#allocation10 + $0x5] ss:$0 sm:$0xff] }
  0xe2   :  { %778 = vmatprep.subr.mxu0 %v1026_v1 }
  0xe3   :  { %779 = vmatpush3.msra.mxu0 %v421_v56 }
  0xe4   :  { %780 = vmatprep.subr.mxu0 %v1026_v1 }
  0xe5   :  { %781 = vmatpush3.msra.mxu0 %v420_v57  ;;  %v657_v57 = vld [vmem:[#allocation10 + $0x6] ss:$0 sm:$0xff] }
  0xe6   :  { %782 = vmatprep.subr.mxu0 %v1026_v1 }
  0xe7   :  { %783 = vmatpush3.msra.mxu0 %v419_v58 }
  0xe8   :  { %784 = vmatprep.subr.mxu0 %v1026_v1 }
  0xe9   :  { %785 = vmatpush3.msra.mxu0 %v418_v59 }
  0xea   :  { %786 = vmatprep.subr.mxu0 %v1026_v1 }
  0xeb   :  { %787 = vmatpush3.msra.mxu0 %v417_v60 }
  0xec   :  { %788 = vmatprep.subr.mxu0 %v1026_v1 }
  0xed   :  { %789 = vmatpush3.msra.mxu0 %v416_v61 }
  0xee   :  { %790 = vmatprep.subr.mxu0 %v1026_v1 }
  0xef   :  { %791 = vmatpush3.msra.mxu0 %v415_v62 }
  0xf0   :  { %792 = vmatprep.subr.mxu0 %v1026_v1 }
  0xf1   :  { %793 = vmatpush3.msra.mxu0 %v414_v63 }
  0xf2   :  { %794 = vmatprep.subr.mxu0 %v1026_v1 }
  0xf3   :  { %795 = vmatpush3.msra.mxu0 %v413_v0  ;;  %v658_v0 = vld [vmem:[#allocation10 + $0x7] ss:$0 sm:$0xff] }
  0xf4   :  { %796 = vmatprep.subr.mxu0 %v1026_v1 }
  0xf5   :  { %797 = vmatpush3.msra.mxu0 %v412_v2 }
  0xf6   :  { %798 = vmatprep.subr.mxu0 %v1026_v1 }
  0xf7   :  { %799 = vmatpush3.msra.mxu0 %v411_v3 }
 0x194   :  { %v192_v34 = vpop.f32.mrf.mxu0 }
 0x196   :  { %v727_v35 = vpop.f32.mrf.mxu0 }
 0x197   :  { %v539_v35 = vld [vmem:[#allocation11 + $0x48] sm:$0xff] }
 0x198   :  { %v270_v36 = vpop.f32.mrf.mxu0 }
 0x199   :  { %v271_v38 = vadd.f32 %v270_v36, %v192_v34  ;;  %v540_v34 = vld [vmem:[#allocation11 + $0x50] sm:$0xff]  ;;  %v538_v36 = vld [vmem:[#allocation11 + $0x40] sm:$0xff] }
 0x19a   :  { %v732_v39 = vpop.f32.mrf.mxu0 }
 0x19b   :  { %v279_v40 = vadd.f32 %v651_v37, %v271_v38  ;;  %v537_v37 = vld [vmem:[#allocation11 + $0x38] sm:$0xff]  ;;  %v536_v38 = vld [vmem:[#allocation11 + $0x30] sm:$0xff]  ;;  %v535_v39 = vld [vmem:[#allocation11 + $0x28] sm:$0xff] }
 0x19d   :  { %v281_v41 = vmul.f32 0.70710677, %v279_v40  ;;  %v280_v43 = vmul.f32 0.5, %v279_v40  ;;  %v534_v40 = vld [vmem:[#allocation11 + $0x20] sm:$0xff] }
 0x19f   :  { %855 = verf.f32 %v281_v41  ;;  %v533_v41 = vld [vmem:[#allocation11 + $0x18] sm:$0xff] }
 0x1ac   :  { %v856_v42 = vpop.eup %855 }
 0x1ad   :  { %v283_v44 = vadd.f32 1.0, %v856_v42  ;;  %v532_v42 = vld [vmem:[#allocation11 + $0x10] sm:$0xff] }
 0x1af   :  { %v284_v45 = vmul.f32 %v283_v44, %v280_v43  ;;  %v531_v43 = vld [vmem:[#allocation11 + $0x8] sm:$0xff]  ;;  %v530_v44 = vld [vmem:[#allocation11] sm:$0xff] }
 0x1b1   :  { %766 = vmatmul.mubr.f32.vlgmr.msra.gmra.mxu1 %v284_v45 }
 0x1b2   :  { %835 = vmatprep.mubr.msk.f32.mxu1 %vm1028_vm0, %v1026_v1  ;;  %804 = vmatpush3.msra.mxu1 %v545_v29 }
 0x1b3   :  { %805 = vmatprep.subr.mxu1 %v1026_v1 }
 0x1b4   :  { %806 = vmatpush3.msra.mxu1 %v544_v30 }
 0x1b5   :  { %807 = vmatprep.subr.mxu1 %v1026_v1 }
 0x1b6   :  { %808 = vmatpush3.msra.mxu1 %v543_v31 }
 0x1b7   :  { %809 = vmatprep.subr.mxu1 %v1026_v1 }
 0x1b8   :  { %810 = vmatpush3.msra.mxu1 %v542_v32 }
 0x1b9   :  { %811 = vmatprep.subr.mxu1 %v1026_v1 }
 0x1ba   :  { %812 = vmatpush3.msra.mxu1 %v541_v33 }
 0x1bb   :  { %813 = vmatprep.subr.mxu1 %v1026_v1 }
 0x1bc   :  { %814 = vmatpush3.msra.mxu1 %v540_v34 }
 0x1bd   :  { %815 = vmatprep.subr.mxu1 %v1026_v1 }
 0x1be   :  { %816 = vmatpush3.msra.mxu1 %v539_v35 }
 0x1bf   :  { %817 = vmatprep.subr.mxu1 %v1026_v1 }
 0x1c0   :  { %818 = vmatpush3.msra.mxu1 %v538_v36 }
 0x1c1   :  { %819 = vmatprep.subr.mxu1 %v1026_v1 }
 0x1c2   :  { %820 = vmatpush3.msra.mxu1 %v537_v37 }
 0x1c3   :  { %821 = vmatprep.subr.mxu1 %v1026_v1 }
 0x1c4   :  { %822 = vmatpush3.msra.mxu1 %v536_v38 }
 0x1c5   :  { %823 = vmatprep.subr.mxu1 %v1026_v1 }
 0x1c6   :  { %824 = vmatpush3.msra.mxu1 %v535_v39 }
 0x1c7   :  { %825 = vmatprep.subr.mxu1 %v1026_v1 }
 0x1c8   :  { %826 = vmatpush3.msra.mxu1 %v534_v40 }
 0x1c9   :  { %827 = vmatprep.subr.mxu1 %v1026_v1 }
 0x1ca   :  { %828 = vmatpush3.msra.mxu1 %v533_v41 }
 0x1cb   :  { %829 = vmatprep.subr.mxu1 %v1026_v1 }
 0x1cc   :  { %830 = vmatpush3.msra.mxu1 %v532_v42 }
 0x1cd   :  { %831 = vmatprep.subr.mxu1 %v1026_v1 }
 0x1ce   :  { %832 = vmatpush3.msra.mxu1 %v531_v43 }
 0x1cf   :  { %833 = vmatprep.subr.mxu1 %v1026_v1 }
 0x1d0   :  { %834 = vmatpush3.msra.mxu1 %v530_v44 }
 0x271   :  { %v374_v47 = vpop.f32.mrf.mxu1 }
 0x272   :  { %v1127_v48 = vadd.f32 %v652_v46, %v374_v47 }
 0x273   :  { %v767_v49 = vpop.f32.mrf.mxu1 }
 0x274   :  { %378 = vadd.xlane.f32.xlu1 %v1127_v48  ;;  %v380_v50 = vmul.f32 %v1127_v48, %v1127_v48 }
 0x278   :  { %381 = vadd.xlane.f32.xlu1 %v380_v50 }
 0x2fd   :  { %v379_v4 = vpop.xlane.xlu1 %378 }
 0x2fe   :  { %v383_v5 = vmul.f32 0.03125, %v379_v4 }
 0x300   :  { %v385_v7 = vmul.f32 %v383_v5, %v383_v5  ;;  %v388_v12 = vsub.f32 %v1127_v48, %v383_v5 }
 0x301   :  { %v382_v6 = vpop.xlane.xlu1 %381 }
 0x302   :  { %v384_v8 = vmul.f32 0.03125, %v382_v6 }
 0x304   :  { %v386_v9 = vsub.f32 %v384_v8, %v385_v7 }
 0x306   :  { %v387_v10 = vmax.f32 %v386_v9, 0.0 }
 0x308   :  { %v389_v11 = vadd.f32 1e-05, %v387_v10 }
 0x30a   :  { %857 = vrsqrt.f32 %v389_v11 }
 0x317   :  { %v858_v13 = vpop.eup %857 }
 0x318   :  { %v391_v15 = vmul.f32 %v858_v13, %v388_v12 }
 0x31a   :  { %v396_v17 = vmul.f32 %v653_v14, %v391_v15 }
 0x31c   :  { %v401_v18 = vadd.f32 %v654_v16, %v396_v17 }
 0x31e   :  { %v403_v19 = vmul.f32 0.70710677, %v401_v18  ;;  %v402_v21 = vmul.f32 0.5, %v401_v18 }
 0x320   :  { %859 = verf.f32 %v403_v19 }
 0x32d   :  { %v860_v20 = vpop.eup %859 }
 0x32e   :  { %v405_v22 = vadd.f32 1.0, %v860_v20 }
 0x330   :  { %v406_v23 = vmul.f32 %v405_v22, %v402_v21 }
 0x332   :  { %801 = vmatmul.mubr.f32.vlgmr.msra.gmra.mxu0 %v406_v23 }
 0x3f2   :  { %v497_v25 = vpop.f32.mrf.mxu0 }
 0x3f3   :  { %v1148_v26 = vadd.f32 %v655_v24, %v497_v25 }
 0x3f4   :  { %v802_v27 = vpop.f32.mrf.mxu0 }
 0x3f5   :  { %501 = vadd.xlane.f32.xlu1 %v1148_v26  ;;  %v503_v28 = vmul.f32 %v1148_v26, %v1148_v26 }
 0x3f7   :  { %504 = vadd.xlane.f32.xlu0 %v503_v28 }
 0x47e   :  { %v502_v45 = vpop.xlane.xlu1 %501 }
 0x47f   :  { %v506_v46 = vmul.f32 0.03125, %v502_v45 }
 0x480   :  { %v505_v47 = vpop.xlane.xlu0 %504 }
 0x481   :  { %v508_v48 = vmul.f32 %v506_v46, %v506_v46  ;;  %v507_v49 = vmul.f32 0.03125, %v505_v47  ;;  %v511_v53 = vsub.f32 %v1148_v26, %v506_v46 }
 0x483   :  { %v509_v50 = vsub.f32 %v507_v49, %v508_v48 }
 0x485   :  { %v510_v51 = vmax.f32 %v509_v50, 0.0 }
 0x487   :  { %v512_v52 = vadd.f32 1e-05, %v510_v51 }
 0x489   :  { %861 = vrsqrt.f32 %v512_v52 }
 0x496   :  { %v862_v54 = vpop.eup %861 }
 0x497   :  { %v514_v56 = vmul.f32 %v862_v54, %v511_v53 }
 0x499   :  { %v519_v58 = vmul.f32 %v656_v55, %v514_v56 }
 0x49b   :  { %v524_v59 = vadd.f32 %v657_v57, %v519_v58 }
 0x49d   :  { %v526_v60 = vmul.f32 0.70710677, %v524_v59  ;;  %v525_v61 = vmul.f32 0.5, %v524_v59 }
 0x49f   :  { %863 = verf.f32 %v526_v60 }
 0x4ac   :  { %v864_v1 = vpop.eup %863 }
 0x4ad   :  { %v528_v62 = vadd.f32 1.0, %v864_v1 }
 0x4af   :  { %v529_v63 = vmul.f32 %v528_v62, %v525_v61 }
 0x4b1   :  { %836 = vmatmul.mubr.f32.vlgmr.msra.gmra.mxu1 %v529_v63 }
 0x571   :  { %v617_v2 = vpop.f32.mrf.mxu1 }
 0x572   :  { %v618_v3 = vadd.f32 %v658_v0, %v617_v2 }
 0x573   :  { %v837_v4 = vpop.f32.mrf.mxu1 }
 0x574   :  { %v621_v5 = vmul.f32 %v618_v3, %v618_v3 }
 0x576   :  { %622 = vadd.xlane.f32.xlu1 %v621_v5 }
 0x5ff   :  { %v623_v6 = vpop.xlane.xlu1 %622 }
 0x600   :  { %v624_v7 = vmax.f32 %v623_v6, 1e-24 }
 0x602   :  { %865 = vrsqrt.f32 %v624_v7 }
 0x60f   :  { %v866_v8 = vpop.eup %865 }
 0x610   :  { %v626_v9 = vmul.f32 %v866_v8, %v618_v3 }
 0x612   :  { %627 = vst [vmem:[#allocation13] sm:$0xff] %v626_v9 }
 0x613   :  { %998 = shalt.err (!%p995_p6)
}
 0x614   :  { %637 = dma.vmem_to_hbm [thread:$0]  %s635_s5, 128, %s1178_s6, [#allocation4]  }
 0x615   :  { %1015 = dma.done.wait [#allocation4], 128  }
 0x616   :  { %1016 = vsyncadd [#allocation4], 4294967168 }
 0x617   :  { %641 = vsyncpa [#allocation3], 1 }
 0x618   :  { %642 = vsyncpa [#allocation6], 1 }
 0x619   :  { %643 = vsyncpa [#allocation9], 1 }
 0x61a   :  { %644 = vsyncpa [#allocation12], 1 }
 0x61b   :  { %645 = vsyncpa [#allocation4], 1 }

</bundles_post_ra>
